<compile_context>
chip_gen: v7x
topology: tpu7x:2x2x1
jax: 0.10.0
libtpu: 0.0.40
codegen_flags: <defaults>
</compile_context>

<pallas_src>
import jax
import jax.numpy as jnp
from jax import lax
from jax.experimental import pallas as pl
from jax.experimental.pallas import tpu as pltpu


# ----------------------------- kernel -----------------------------------------

def command_classifier_kernel(x_ref, wqkv_ref, bqkv_ref, act_ref, a_sq_ref, out_ref):
    tb, S, E = x_ref.shape

    x = x_ref[...].astype(jnp.float32)            # (tb, S, E)
    wqkv = wqkv_ref[...].astype(jnp.float32)      # (E, 3E)  [Wq*scale | Wk | Wv]
    bqkv = bqkv_ref[...].astype(jnp.float32)      # (1, 3E)  [bq*scale | bk | bv]
    acts = act_ref[...].astype(jnp.float32)       # (A, E)
    a_sq = a_sq_ref[...].astype(jnp.float32)      # (1, A)  precomputed ||a||^2

    # --- fused QKV projection: one (tb*S, E) @ (E, 3E) MXU matmul ---
    xf = x.reshape(tb * S, E)
    qkv = jnp.dot(xf, wqkv, preferred_element_type=jnp.float32) + bqkv    # (tb*S, 3E)
    # NOTE: the splits land at lane offsets E and 2E; at E=32 they are inside one
    # 128-lane tile. If the bundle dump shows relayout copies here, pad each block
    # to 128 lanes at init instead (zero columns are harmless downstream).
    q = qkv[:, :E].reshape(tb, S, E)              # 1/sqrt(E) already folded in
    k = qkv[:, E:2 * E].reshape(tb, S, E)
    v = qkv[:, 2 * E:].reshape(tb, S, E)

    # --- scaled dot-product attention scores + softmax (dim=2) ---
    scores = jnp.einsum('bqe,bke->bqk', q, k,
                        preferred_element_type=jnp.float32)               # (tb, S, S)
    m = jnp.max(scores, axis=-1, keepdims=True)
    p = jnp.exp(scores - m)
    inv_l = pl.reciprocal(jnp.sum(p, axis=-1, keepdims=True), approx=False)
    attn = p * inv_l                                                      # (tb, S, S)

    # --- mean-pool fused into the attention-value product (VPU + sublane reduce) ---
    # pooled[b] = sum_s ((1/S) * sum_q attn[b,q,s]) * v[b,s,:]
    #           = mean_q (attn[b] @ V[b]) exactly.
    w = jnp.sum(attn, axis=1) * jnp.float32(1.0 / S)                      # (tb, S)
    pooled = jnp.sum(w[:, :, None] * v, axis=1)                           # (tb, E)

    # --- cosine similarity vs action embeddings (dim=2, eps=1e-8) ---
    # torch.nn.functional.cosine_similarity clamps the PRODUCT of norms at eps;
    # clamping the product of squared norms at eps^2 under one rsqrt is identical.
    eps_sq = jnp.float32(1e-16)
    dots = jnp.einsum('be,ae->ba', pooled, acts,
                      preferred_element_type=jnp.float32)                 # (tb, A)
    x_sq = jnp.sum(pooled * pooled, axis=-1, keepdims=True)               # (tb, 1)
    out_ref[...] = (dots * lax.rsqrt(jnp.maximum(x_sq * a_sq, eps_sq))
                    ).astype(out_ref.dtype)


# ----------------------------- init-time parameter fusion ----------------------

def fuse_qkv_params(wq, wk, wv, bq, bk, bv):
    """One-time fusion of the three Linear layers into (E,3E)/(1,3E), with the
    1/sqrt(E) softmax scale folded into the query block. Call once at model init."""
    E = wq.shape[0]
    scale = 1.0 / jnp.sqrt(jnp.float32(E))
    wqkv = jnp.concatenate([wq * scale, wk, wv], axis=1)          # (E, 3E)
    bqkv = jnp.concatenate([bq * scale, bk, bv], axis=0).reshape(1, 3 * E)
    return wqkv, bqkv


def precompute_action_stats(action_embeddings):
    """One-time precompute of the action embeddings (f32) and their squared norms."""
    acts = action_embeddings.astype(jnp.float32)                  # (A, E)
    a_sq = jnp.sum(acts * acts, axis=-1).reshape(1, -1)           # (1, A)
    return acts, a_sq


# ----------------------------- pallas_call wrapper ------------------------------

def command_classifier(x, wqkv, bqkv, acts, a_sq, *, batch_block=None):
    """x: (B, S, E); fused params from fuse_qkv_params / precompute_action_stats.
    Returns (B, A) cosine similarities.

    batch_block: rows of the batch per grid step.
      * Default (None) = whole batch in one step (block == full array dims, so no
        (8,128) divisibility concerns) — right choice for the tiny demo shapes.
      * For large B, pick batch_block so tb*S >= 128 (v5e) / 256 (v6e,v7x) to fill the
        MXU, tb | B, and >= 2 grid steps so the "parallel" axis can shard across v7x's
        two TensorCores. On v7x budget ~half the VMEM you would on v5e/v6e.
    """
    B, S, E = x.shape
    A = acts.shape[0]
    tb = B if batch_block is None else batch_block

    f32 = 4
    flops = (2 * B * S * E * 3 * E      # fused QKV projection
             + 2 * B * S * S * E        # Q @ K^T
             + 2 * B * S * E            # fused mean-pool multiply-add
             + 2 * B * A * E)           # pooled @ acts^T
    bytes_accessed = (x.size + wqkv.size + bqkv.size + acts.size + a_sq.size + B * A) * f32
    cost = pl.CostEstimate(flops=flops,
                           transcendentals=B * S * S + B * S + B * A,
                           bytes_accessed=bytes_accessed)

    return pl.pallas_call(
        command_classifier_kernel,
        out_shape=jax.ShapeDtypeStruct((B, A), jnp.float32),
        grid=(pl.cdiv(B, tb),),
        in_specs=[
            pl.BlockSpec((tb, S, E), lambda i: (i, 0, 0)),
            pl.BlockSpec((E, 3 * E), lambda i: (0, 0)),
            pl.BlockSpec((1, 3 * E), lambda i: (0, 0)),
            pl.BlockSpec((A, E), lambda i: (0, 0)),
            pl.BlockSpec((1, A), lambda i: (0, 0)),
        ],
        out_specs=pl.BlockSpec((tb, A), lambda i: (i, 0)),
        compiler_params=pltpu.CompilerParams(dimension_semantics=("parallel",)),
        cost_estimate=cost,
    )(x, wqkv, bqkv, acts, a_sq)


# ----------------------------- pure-JAX reference -------------------------------

def _reference(x, wq, wk, wv, bq, bk, bv, acts):
    # Mirrors the PyTorch forward (incl. torch cosine-sim product-of-norms eps rule).
    q = jnp.einsum('bse,ef->bsf', x, wq) + bq
    k = jnp.einsum('bse,ef->bsf', x, wk) + bk
    v = jnp.einsum('bse,ef->bsf', x, wv) + bv
    scores = jnp.einsum('bqe,bke->bqk', q, k) / jnp.sqrt(jnp.float32(x.shape[-1]))
    attn = jax.nn.softmax(scores, axis=-1)
    pooled = jnp.mean(jnp.einsum('bqk,bke->bqe', attn, v), axis=1)
    eps = 1e-8
    dots = pooled @ acts.T
    xn = jnp.linalg.norm(pooled, axis=-1, keepdims=True)
    an = jnp.linalg.norm(acts, axis=-1)
    return dots / jnp.maximum(xn * an[None, :], eps)


if __name__ == "__main__":
    B, S, E, A = 2, 8, 32, 4   # batch, seq, embed_dim, num_actions

    key = jax.random.PRNGKey(0)
    kx, kq, kk, kv, kbq, kbk, kbv, ka = jax.random.split(key, 8)

    x = jax.random.normal(kx, (B, S, E), dtype=jnp.float32)

    # Synthetic Linear(embed_dim, embed_dim) x3 parameters, already transposed so
    # Q = x @ Wq + bq.
    w_scale = 1.0 / jnp.sqrt(jnp.float32(E))
    wq = jax.random.normal(kq, (E, E), dtype=jnp.float32) * w_scale
    wk = jax.random.normal(kk, (E, E), dtype=jnp.float32) * w_scale
    wv = jax.random.normal(kv, (E, E), dtype=jnp.float32) * w_scale
    bq = jax.random.normal(kbq, (E,), dtype=jnp.float32) * 0.01
    bk = jax.random.normal(kbk, (E,), dtype=jnp.float32) * 0.01
    bv = jax.random.normal(kbv, (E,), dtype=jnp.float32) * 0.01

    # action_embeddings: (A, E); the module's unsqueeze(0) -> broadcast over batch.
    action_embeddings = jax.random.normal(ka, (A, E), dtype=jnp.float32)

    # --- init-time (one-time) parameter fusion & precompute ---
    wqkv, bqkv = fuse_qkv_params(wq, wk, wv, bq, bk, bv)
    acts, a_sq = precompute_action_stats(action_embeddings)
    (wqkv, bqkv, acts, a_sq) = jax.block_until_ready((wqkv, bqkv, acts, a_sq))

    sims = command_classifier(x, wqkv, bqkv, acts, a_sq)
    sims = jax.block_until_ready(sims)

    ref = _reference(x, wq, wk, wv, bq, bk, bv, action_embeddings)
    assert sims.shape == (B, A)
    assert jnp.allclose(sims, ref, atol=1e-5, rtol=1e-5), (sims, ref)

    print("KERNEL_OK")
</pallas_src>

<mosaic_0001>
module attributes {stable_mosaic.version = 11 : i64} {
  func.func @command_classifier_kernel(%arg0: i32, %arg1: memref<2x8x32xf32, #tpu.memory_space<vmem>>, %arg2: memref<32x96xf32, #tpu.memory_space<vmem>>, %arg3: memref<1x96xf32, #tpu.memory_space<vmem>>, %arg4: memref<4x32xf32, #tpu.memory_space<vmem>>, %arg5: memref<1x4xf32, #tpu.memory_space<vmem>>, %arg6: memref<2x4xf32, #tpu.memory_space<vmem>>) attributes {dimension_semantics = [#tpu.dimension_semantics<parallel>], iteration_bounds = array<i64: 1>, scalar_prefetch = 0 : i64, scratch_operands = 0 : i64, tpu.core_type = #tpu.core_type<tc>, window_params = [{transform_indices = @transform_0, window_bounds = array<i64: 2, 8, 32>}, {pipeline_mode = #tpu.pipeline_mode<synchronous>, transform_indices = @transform_1, window_bounds = array<i64: 32, 96>}, {pipeline_mode = #tpu.pipeline_mode<synchronous>, transform_indices = @transform_2, window_bounds = array<i64: 1, 96>}, {pipeline_mode = #tpu.pipeline_mode<synchronous>, transform_indices = @transform_3, window_bounds = array<i64: 4, 32>}, {pipeline_mode = #tpu.pipeline_mode<synchronous>, transform_indices = @transform_4, window_bounds = array<i64: 1, 4>}, {transform_indices = @transform_5, window_bounds = array<i64: 2, 4>}]} {
    %c0 = arith.constant 0 : index
    %c0_0 = arith.constant 0 : index
    %c0_1 = arith.constant 0 : index
    %0 = vector.load %arg1[%c0, %c0_0, %c0_1] : memref<2x8x32xf32, #tpu.memory_space<vmem>>, vector<2x8x32xf32>
    %c0_2 = arith.constant 0 : index
    %c0_3 = arith.constant 0 : index
    %1 = vector.load %arg2[%c0_2, %c0_3] : memref<32x96xf32, #tpu.memory_space<vmem>>, vector<32x96xf32>
    %c0_4 = arith.constant 0 : index
    %c0_5 = arith.constant 0 : index
    %2 = vector.load %arg3[%c0_4, %c0_5] : memref<1x96xf32, #tpu.memory_space<vmem>>, vector<1x96xf32>
    %c0_6 = arith.constant 0 : index
    %c0_7 = arith.constant 0 : index
    %3 = vector.load %arg4[%c0_6, %c0_7] : memref<4x32xf32, #tpu.memory_space<vmem>>, vector<4x32xf32>
    %c0_8 = arith.constant 0 : index
    %c0_9 = arith.constant 0 : index
    %4 = vector.load %arg5[%c0_8, %c0_9] : memref<1x4xf32, #tpu.memory_space<vmem>>, vector<1x4xf32>
    %5 = vector.shape_cast %0 : vector<2x8x32xf32> to vector<16x32xf32>
    %cst = arith.constant dense<0.000000e+00> : vector<16x96xf32>
    %6 = tpu.matmul %5, %1, %cst {dimension_numbers = #tpu.dot_dimension_numbers<[1], [0], [0], [1], [0, 0, 1, 1], [], []>} : vector<16x32xf32>, vector<32x96xf32>, vector<16x96xf32> -> vector<16x96xf32>
    %7 = vector.broadcast %2 : vector<1x96xf32> to vector<16x96xf32>
    %8 = arith.addf %6, %7 : vector<16x96xf32>
    %9 = vector.extract_strided_slice %8 {offsets = [0, 0], sizes = [16, 32], strides = [1, 1]} : vector<16x96xf32> to vector<16x32xf32>
    %10 = vector.shape_cast %9 : vector<16x32xf32> to vector<2x8x32xf32>
    %11 = vector.extract_strided_slice %8 {offsets = [0, 32], sizes = [16, 32], strides = [1, 1]} : vector<16x96xf32> to vector<16x32xf32>
    %12 = vector.shape_cast %11 : vector<16x32xf32> to vector<2x8x32xf32>
    %13 = vector.extract_strided_slice %8 {offsets = [0, 64], sizes = [16, 32], strides = [1, 1]} : vector<16x96xf32> to vector<16x32xf32>
    %14 = vector.shape_cast %13 : vector<16x32xf32> to vector<2x8x32xf32>
    "tpu.trace_start"() <{level = 10 : i32, message = "bqe,bke->bqk"}> : () -> ()
    %cst_10 = arith.constant dense<0.000000e+00> : vector<2x8x8xf32>
    %15 = tpu.matmul %10, %12, %cst_10 {dimension_numbers = #tpu.dot_dimension_numbers<[2], [2], [1], [1], [0, 0, 0, 1, 1, 1], [0], [0]>} : vector<2x8x32xf32>, vector<2x8x32xf32>, vector<2x8x8xf32> -> vector<2x8x8xf32>
    "tpu.trace_stop"() : () -> ()
    %cst_11 = arith.constant dense<0xFF800000> : vector<2x8xf32>
    %16 = vector.multi_reduction <maximumf>, %15, %cst_11 [2] : vector<2x8x8xf32> to vector<2x8xf32>
    %17 = vector.shape_cast %16 : vector<2x8xf32> to vector<2x8x1xf32>
    %18 = vector.broadcast %17 : vector<2x8x1xf32> to vector<2x8x8xf32>
    %19 = arith.subf %15, %18 : vector<2x8x8xf32>
    %20 = math.exp %19 : vector<2x8x8xf32>
    %cst_12 = arith.constant dense<0.000000e+00> : vector<2x8xf32>
    %21 = vector.multi_reduction <add>, %20, %cst_12 [2] : vector<2x8x8xf32> to vector<2x8xf32>
    %22 = vector.shape_cast %21 : vector<2x8xf32> to vector<2x8x1xf32>
    %23 = tpu.reciprocal %22 : vector<2x8x1xf32> -> vector<2x8x1xf32>
    %24 = vector.broadcast %23 : vector<2x8x1xf32> to vector<2x8x8xf32>
    %25 = arith.mulf %20, %24 : vector<2x8x8xf32>
    %cst_13 = arith.constant dense<0.000000e+00> : vector<2x8xf32>
    %26 = vector.multi_reduction <add>, %25, %cst_13 [1] : vector<2x8x8xf32> to vector<2x8xf32>
    %cst_14 = arith.constant 1.250000e-01 : f32
    %27 = vector.broadcast %cst_14 : f32 to vector<2x8xf32>
    %28 = arith.mulf %26, %27 : vector<2x8xf32>
    %29 = vector.shape_cast %28 : vector<2x8xf32> to vector<2x8x1xf32>
    %30 = vector.broadcast %29 : vector<2x8x1xf32> to vector<2x8x32xf32>
    %31 = arith.mulf %30, %14 : vector<2x8x32xf32>
    %cst_15 = arith.constant dense<0.000000e+00> : vector<2x32xf32>
    %32 = vector.multi_reduction <add>, %31, %cst_15 [1] : vector<2x8x32xf32> to vector<2x32xf32>
    "tpu.trace_start"() <{level = 10 : i32, message = "be,ae->ba"}> : () -> ()
    %cst_16 = arith.constant dense<0.000000e+00> : vector<2x4xf32>
    %33 = tpu.matmul %32, %3, %cst_16 {dimension_numbers = #tpu.dot_dimension_numbers<[1], [1], [0], [0], [0, 0, 1, 0], [], []>} : vector<2x32xf32>, vector<4x32xf32>, vector<2x4xf32> -> vector<2x4xf32>
    "tpu.trace_stop"() : () -> ()
    %34 = arith.mulf %32, %32 : vector<2x32xf32>
    %cst_17 = arith.constant dense<0.000000e+00> : vector<2xf32>
    %35 = vector.multi_reduction <add>, %34, %cst_17 [1] : vector<2x32xf32> to vector<2xf32>
    %36 = vector.shape_cast %35 : vector<2xf32> to vector<2x1xf32>
    %37 = vector.broadcast %36 : vector<2x1xf32> to vector<2x4xf32>
    %38 = vector.broadcast %4 : vector<1x4xf32> to vector<2x4xf32>
    %39 = arith.mulf %37, %38 : vector<2x4xf32>
    %cst_18 = arith.constant 1.000000e-16 : f32
    %40 = vector.broadcast %cst_18 : f32 to vector<2x4xf32>
    %41 = arith.maximumf %39, %40 : vector<2x4xf32>
    %42 = math.rsqrt %41 : vector<2x4xf32>
    %43 = arith.mulf %33, %42 : vector<2x4xf32>
    %c0_19 = arith.constant 0 : index
    %c0_20 = arith.constant 0 : index
    %44 = vector.load %arg6[%c0_19, %c0_20] : memref<2x4xf32, #tpu.memory_space<vmem>>, vector<2x4xf32>
    tpu.vector_store %arg6[%c0_19, %c0_20], %43 {strides = array<i32>} : memref<2x4xf32, #tpu.memory_space<vmem>>, vector<2x4xf32>,
    return
  }
  func.func @transform_0(%arg0: i32) -> (i32, i32, i32) {
    %c0_i32 = arith.constant 0 : i32
    %c0_i32_0 = arith.constant 0 : i32
    %c0_i32_1 = arith.constant 0 : i32
    return %arg0, %c0_i32, %c0_i32_0 : i32, i32, i32
  }
  func.func @transform_1(%arg0: i32) -> (i32, i32) {
    %c0_i32 = arith.constant 0 : i32
    %c0_i32_0 = arith.constant 0 : i32
    %c0_i32_1 = arith.constant 0 : i32
    return %c0_i32, %c0_i32_0 : i32, i32
  }
  func.func @transform_2(%arg0: i32) -> (i32, i32) {
    %c0_i32 = arith.constant 0 : i32
    %c0_i32_0 = arith.constant 0 : i32
    %c0_i32_1 = arith.constant 0 : i32
    return %c0_i32, %c0_i32_0 : i32, i32
  }
  func.func @transform_3(%arg0: i32) -> (i32, i32) {
    %c0_i32 = arith.constant 0 : i32
    %c0_i32_0 = arith.constant 0 : i32
    %c0_i32_1 = arith.constant 0 : i32
    return %c0_i32, %c0_i32_0 : i32, i32
  }
  func.func @transform_4(%arg0: i32) -> (i32, i32) {
    %c0_i32 = arith.constant 0 : i32
    %c0_i32_0 = arith.constant 0 : i32
    %c0_i32_1 = arith.constant 0 : i32
    return %c0_i32, %c0_i32_0 : i32, i32
  }
  func.func @transform_5(%arg0: i32) -> (i32, i32) {
    %c0_i32 = arith.constant 0 : i32
    %c0_i32_0 = arith.constant 0 : i32
    return %arg0, %c0_i32 : i32, i32
  }
}

</mosaic_0001>

<bundles_post_ra>
// kernel: tpu_custom_call.1
= control target key start
LH: loop header
LB: loop body
LE: loop exit
PB: predicated region body
PF: predicated region fallthrough
CT: control target
= control target key end

     0   :  { %10 = vsyncpa [#allocation3], 0  ;;  %s741_s0 = inlined_call_operand.hbm [shape: f32[2,8,32], index: 0, kind: input, shape index: {}]   ;;  %s742_s1 = inlined_call_operand.hbm [shape: f32[32,96], index: 1, kind: input, shape index: {}]   ;;  %s743_s2 = inlined_call_operand.vmem [shape: f32[1,96], index: 2, kind: input, shape index: {}]   ;;  %s744_s3 = inlined_call_operand.vmem [shape: f32[4,32], index: 3, kind: input, shape index: {}]   ;;  %s745_s4 = inlined_call_operand.vmem [shape: f32[1,4], index: 4, kind: input, shape index: {}]   ;;  %s746_s5 = inlined_call_operand.hbm [shape: f32[2,4], index: 5, kind: output, shape index: {}]  }
   0x1   :  { %11 = vsyncpa [#allocation6], 0 }
   0x2   :  { %12 = vsyncpa [#allocation4], 0  ;;  %s630_s18 = smov [#allocation2]   ;;  %s558_s22 = scalar_lea.hbm %s741_s0, 256 }
   0x3   :  { %s18_s19 = sshll.u32 %s630_s18, 4  ;;  %p559_p0 = scmp.ne.s32.totalorder %s741_s0, %s558_s22  ;;  %s19_s19 = int_to_ptr.vmem [resolvable:$true] %s18_s19 }
   0x4   :  { %p562_p1 = scmp.lt.u32.totalorder %s558_s22, %s741_s0 }
   0x6   :  { %p564_p2 = pnand %p562_p1, %p559_p0 }
   0x8   :  { %567 = shalt.err (!%p564_p2)
}
   0x9   :  { %s568_s27 = scalar_lea.vmem %s19_s19, 256  ;;  %p573_p4 = scmp.lt.s32.totalorder %s19_s19, %s19_s19 }
   0xa   :  { %p569_p3 = scmp.ne.s32.totalorder %s19_s19, %s568_s27  ;;  %p574_p5 = scmp.lt.s32.totalorder %s568_s27, %s568_s27 }
   0xc   :  { %p575_p6 = por %p574_p5, %p573_p4 }
   0xe   :  { %p576_p7 = pnand %p575_p6, %p569_p3 }
  0x10   :  { %579 = shalt.err (!%p576_p7)
}
  0x11   :  { %s631_s28 = smov 128   ;;  %s632_s29 = smov 8  }
  0x12   :  { %24 = dma.hbm_to_vmem [thread:$0]  %s741_s0, 256, %s19_s19, [#allocation3], %s631_s28, %s631_s28, %s632_s29  }
  0x13   :  { %s633_s7 = smov [#allocation5]   ;;  %s580_s11 = scalar_lea.hbm %s742_s1, 512 }
  0x14   :  { %s30_s8 = sshll.u32 %s633_s7, 4  ;;  %p581_p8 = scmp.ne.s32.totalorder %s742_s1, %s580_s11  ;;  %s31_s8 = int_to_ptr.vmem [resolvable:$true] %s30_s8 }
  0x15   :  { %p584_p9 = scmp.lt.u32.totalorder %s580_s11, %s742_s1 }
  0x17   :  { %p586_p10 = pnand %p584_p9, %p581_p8 }
  0x19   :  { %589 = shalt.err (!%p586_p10)
}
  0x1a   :  { %s590_s16 = scalar_lea.vmem %s31_s8, 512  ;;  %p595_p12 = scmp.lt.s32.totalorder %s31_s8, %s31_s8 }
  0x1b   :  { %p591_p11 = scmp.ne.s32.totalorder %s31_s8, %s590_s16  ;;  %p596_p13 = scmp.lt.s32.totalorder %s590_s16, %s590_s16 }
  0x1d   :  { %p597_p0 = por %p596_p13, %p595_p12 }
  0x1f   :  { %p598_p1 = pnand %p597_p0, %p591_p11 }
  0x21   :  { %601 = shalt.err (!%p598_p1)
}
  0x22   :  { %36 = dma.hbm_to_vmem [thread:$0]  %s742_s1, 512, %s31_s8, [#allocation6], %s631_s28, %s631_s28, %s632_s29  }
  0x23   :  { %624 = dma.done.wait [#allocation3], 256  }
  0x24   :  { %625 = vsyncadd [#allocation3], 4294967040 }
  0x25   :  { %626 = dma.done.wait [#allocation6], 512  }
  0x26   :  { %627 = vsyncadd [#allocation6], 4294966784  ;;  %vm64_vm0 = vcmask 261120   ;;  %v51_v0 = vld [vmem:[#allocation5] sm:$0xff]  ;;  %v52_v1 = vld [vmem:[#allocation5 + $0x8] sm:$0xff]  ;;  %v634_v8 = vmov 0.0  }
  0x27   :  { %v53_v2 = vld [vmem:[#allocation5 + $0x10] sm:$0xff]  ;;  %v531_v3 = vpack.c.bf16 %v52_v1, %v51_v0  ;;  %v54_v4 = vld [vmem:[#allocation5 + $0x18] sm:$0xff]  ;;  %516 = vmatprep.subr.mxu1 %v634_v8  ;;  %vm635_vm1 = vmmov 0   ;;  %s636_s19 = smov 96   ;;  %vm300_vm2 = vcmask 64512   ;;  %vm347_vm3 = vcmask 785920  }
  0x28   :  { %v49_v5 = vld [vmem:[#allocation2] sm:$0xff]  ;;  %v535_v6 = vpack.c.bf16 %v54_v4, %v53_v2  ;;  %v50_v7 = vld [vmem:[#allocation2 + $0x8] sm:$0xff]  ;;  %518 = vmatprep.mubr.msk.f32.mxu1 %vm635_vm1, %v634_v8  ;;  %vm364_vm4 = vcmask 1041409   ;;  %vm451_vm5 = vcmask 254976   ;;  %s638_s23 = smov [#allocation7]   ;;  %vm465_vm6 = vcmask 25600  }
  0x29   :  { %513 = vmatprep.mubr.msk.f32.mxu0 %vm64_vm0, %v49_v5  ;;  %532 = vmatprep.subr.bf16.mxu0 %v531_v3  ;;  %v483_v9 = vld [vmem:[%s743_s2] ss:$0 sm:$0xff]  ;;  %s473_s24 = sshll.u32 %s638_s23, 4  ;;  %s474_s24 = int_to_ptr.vmem [resolvable:$true] %s473_s24 }
  0x2a   :  { %534 = vmatpush3.bf16.msra.mxu0 %v531_v3  ;;  %v56_v54 = vld [vmem:[%s744_s3] sm:$0xf]  ;;  %s637_s3 = smov 64   ;;  %s602_s25 = scalar_lea.vmem %s474_s24, 32 }
  0x2b   :  { %536 = vmatprep.subr.bf16.mxu0 %v535_v6  ;;  %p603_p2 = scmp.ne.s32.totalorder %s474_s24, %s602_s25  ;;  %p607_p3 = scmp.lt.s32.totalorder %s474_s24, %s474_s24 }
  0x2c   :  { %p608_p4 = scmp.lt.s32.totalorder %s602_s25, %s602_s25 }
  0x2e   :  { %538 = vmatpush3.bf16.msra.mxu0 %v535_v6  ;;  %p609_p5 = por %p608_p4, %p607_p3 }
  0x2f   :  { %526 = vmatprep.subr.mxu0 %v634_v8 }
  0x30   :  { %p610_p6 = pnand %p609_p5, %p603_p2 }
  0x31   :  { %514 = vmatmul.mubr.msk.f32.vlgmr.msra.gmra.mrb[0].mxu0 %vm64_vm0, %v50_v7 }
  0x32   :  { %528 = vmatprep.mubr.msk.f32.mxu0 %vm635_vm1, %v634_v8 }
  0x37   :  { %527 = vmatpush3.xpose.msk.msra.mxu0 %vm64_vm0, %v56_v54 }
 0x104   :  { %v515_v10 = vpop.f32.mrb[0].mxu0 }
 0x105   :  { %v137_v11 = vpop.f32.mrb[1].mxu0  ;;  %v703_v13 = vadd.f32 %v515_v10, %v483_v9 }
 0x106   :  { %v700_v12 = vadd.f32 %v483_v9, %v137_v11 }
 0x108   :  { %147 = vrot.lane.b32.xlu0 %v700_v12, %s636_s19 }
 0x10c   :  { %224 = vrot.lane.b32.xlu0 %v703_v13, %s636_s19 }
 0x17a   :  { %v148_v14 = vpop.permute.xlu0 %147 }
 0x17b   :  { %517 = vmatpush3.xpose.msk.msra.mxu1 %vm64_vm0, %v148_v14 }
 0x17c   :  { %521 = vmatprep.subr.mxu1 %v634_v8 }
 0x17e   :  { %519 = vmatmul.mubr.msk.f32.vlgmr.msra.gmra.mrb[0].mxu1 %vm64_vm0, %v700_v12  ;;  %v225_v15 = vpop.permute.xlu0 %224 }
 0x17f   :  { %522 = vmatpush3.xpose.msk.msra.mxu1 %vm64_vm0, %v225_v15  ;;  %523 = vmatprep.mubr.msk.f32.mxu1 %vm635_vm1, %v634_v8 }
 0x182   :  { %524 = vmatmul.mubr.msk.f32.vlgmr.msra.gmra.mrb[2].mxu1 %vm64_vm0, %v703_v13 }
 0x251   :  { %v219_v16 = vpop.f32.mrb[0].mxu1 }
 0x252   :  { %v520_v17 = vpop.f32.mrb[1].mxu1  ;;  %v301_v18 = vsel %vm300_vm2, %v219_v16, -inf }
 0x253   :  { %302 = vmax.xlane.f32.xlu1 %v301_v18 }
 0x255   :  { %v296_v19 = vpop.f32.mrb[2].mxu1 }
 0x256   :  { %v525_v20 = vpop.f32.mrb[3].mxu1  ;;  %v304_v21 = vsel %vm300_vm2, %v296_v19, -inf }
 0x257   :  { %305 = vmax.xlane.f32.xlu1 %v304_v21 }
 0x2e0   :  { %v303_v22 = vpop.xlane.xlu1 %302 }
 0x2e1   :  { %v307_v23 = vsub.f32 %v219_v16, %v303_v22  ;;  %v492_v16 = vld [vmem:[%s745_s4] ss:$0 sm:$0xff] }
 0x2e3   :  { %v309_v24 = vmul.f32 1.442695, %v307_v23 }
 0x2e4   :  { %v306_v25 = vpop.xlane.xlu1 %305 }
 0x2e5   :  { %548 = vpow2.f32 %v309_v24  ;;  %v308_v26 = vsub.f32 %v296_v19, %v306_v25 }
 0x2e7   :  { %v311_v27 = vmul.f32 1.442695, %v308_v26 }
 0x2e9   :  { %550 = vpow2.f32 %v311_v27 }
 0x2ef   :  { %v549_v28 = vpop.eup %548 }
 0x2f0   :  { %v313_v29 = vsel %vm300_vm2, %v549_v28, 0.0 }
 0x2f1   :  { %314 = vadd.xlane.f32.xlu0 %v313_v29 }
 0x2f3   :  { %v551_v30 = vpop.eup %550 }
 0x2f4   :  { %v316_v31 = vsel %vm300_vm2, %v551_v30, 0.0 }
 0x2f5   :  { %317 = vadd.xlane.f32.xlu1 %v316_v31 }
 0x37e   :  { %v315_v32 = vpop.xlane.xlu0 %314 }
 0x37f   :  { %552 = vrcp.f32 %v315_v32 }
 0x382   :  { %v318_v33 = vpop.xlane.xlu1 %317 }
 0x383   :  { %554 = vrcp.f32 %v318_v33 }
 0x389   :  { %v553_v34 = vpop.eup %552 }
 0x38a   :  { %v321_v35 = vmul.f32 %v553_v34, %v549_v28 }
 0x38c   :  { %v323_v36 = vsel %vm300_vm2, %v321_v35, 0.0 }
 0x38d   :  { %v555_v37 = vpop.eup %554  ;;  %v324_v38 = vrot.slane %v323_v36, 4 }
 0x38e   :  { %v322_v39 = vmul.f32 %v555_v37, %v551_v30 }
 0x38f   :  { %v325_v40 = vadd.f32 %v324_v38, %v323_v36 }
 0x390   :  { %v330_v41 = vsel %vm300_vm2, %v322_v39, 0.0 }
 0x391   :  { %v326_v42 = vrot.slane %v325_v40, 2  ;;  %v331_v43 = vrot.slane %v330_v41, 4 }
 0x393   :  { %v327_v44 = vadd.f32 %v326_v42, %v325_v40  ;;  %v332_v45 = vadd.f32 %v331_v43, %v330_v41 }
 0x395   :  { %v328_v46 = vrot.slane %v327_v44, 1  ;;  %v333_v47 = vrot.slane %v332_v45, 2 }
 0x397   :  { %v329_v48 = vadd.f32 %v328_v46, %v327_v44  ;;  %v334_v49 = vadd.f32 %v333_v47, %v332_v45 }
 0x399   :  { %v337_v50 = vmul.f32 0.125, %v329_v48  ;;  %v335_v51 = vrot.slane %v334_v49, 1 }
 0x39b   :  { %340 = vbcast.lane.b32.xlu1 %v337_v50, 256  ;;  %v336_v52 = vadd.f32 %v335_v51, %v334_v49 }
 0x39d   :  { %v338_v53 = vmul.f32 0.125, %v336_v52 }
 0x39f   :  { %343 = vbcast.lane.b32.xlu1 %v338_v53, 256 }
 0x40d   :  { %v341_v55 = vpop.permute.xlu1 %340 }
 0x40e   :  { %v345_v56 = vmul.f32 %v341_v55, %v700_v12 }
 0x410   :  { %v348_v57 = vsel %vm347_vm3, %v345_v56, 0.0 }
 0x411   :  { %v349_v58 = vrot.slane %v348_v57, 4  ;;  %v344_v59 = vpop.permute.xlu1 %343 }
 0x412   :  { %v346_v60 = vmul.f32 %v344_v59, %v703_v13 }
 0x413   :  { %v350_v61 = vadd.f32 %v349_v58, %v348_v57 }
 0x414   :  { %v355_v62 = vsel %vm347_vm3, %v346_v60, 0.0 }
 0x415   :  { %v351_v63 = vrot.slane %v350_v61, 2  ;;  %v356_v0 = vrot.slane %v355_v62, 4 }
 0x417   :  { %v352_v1 = vadd.f32 %v351_v63, %v350_v61  ;;  %v357_v2 = vadd.f32 %v356_v0, %v355_v62 }
 0x419   :  { %v358_v3 = vrot.slane %v357_v2, 2  ;;  %v353_v4 = vrot.slane %v352_v1, 1 }
 0x41b   :  { %v359_v5 = vadd.f32 %v358_v3, %v357_v2  ;;  %v354_v7 = vadd.f32 %v353_v4, %v352_v1 }
 0x41d   :  { %v360_v6 = vrot.slane %v359_v5, 1  ;;  %v443_v11 = vmul.f32 %v354_v7, %v354_v7 }
 0x41f   :  { %v361_v8 = vadd.f32 %v360_v6, %v359_v5 }
 0x421   :  { %v365_v9 = vsel %vm364_vm4, %v361_v8, %v354_v7  ;;  %v444_v10 = vmul.f32 %v361_v8, %v361_v8 }
 0x422   :  { %366 = vrot.lane.b32.xlu1 %v365_v9, %s637_s3 }
 0x423   :  { %v447_v12 = vsel %vm364_vm4, %v444_v10, %v443_v11 }
 0x426   :  { %448 = vrot.lane.b32.xlu1 %v447_v12, %s637_s3 }
 0x494   :  { %v367_v13 = vpop.permute.xlu1 %366 }
 0x495   :  { %529 = vmatmul.mubr.msk.f32.vlgmr.msra.gmra.mrb[2].mxu0 %vm64_vm0, %v367_v13 }
 0x498   :  { %v449_v14 = vpop.permute.xlu1 %448 }
 0x499   :  { %v452_v15 = vsel %vm451_vm5, %v449_v14, 0.0 }
 0x49a   :  { %453 = vadd.xlane.f32.xlu0 %v452_v15 }
 0x527   :  { %v454_v17 = vpop.xlane.xlu0 %453 }
 0x528   :  { %v461_v18 = vmul.f32 %v492_v16, %v454_v17 }
 0x52a   :  { %v462_v19 = vmax.f32 %v461_v18, 1e-16 }
 0x52c   :  { %556 = vrsqrt.f32 %v462_v19 }
 0x536   :  { %v557_v20 = vpop.eup %556 }
 0x568   :  { %v439_v21 = vpop.f32.mrb[2].mxu0 }
 0x569   :  { %v464_v22 = vmul.f32 %v557_v20, %v439_v21  ;;  %v530_v23 = vpop.f32.mrb[3].mxu0 }
 0x56b   :  { %466 = vst.msk [vmem:[#allocation7] sm:$0x3] %vm465_vm6, %v464_v22 }
 0x56c   :  { %613 = shalt.err (!%p610_p6)
}
 0x56d   :  { %s614_s27 = scalar_lea.hbm %s746_s5, 32 }
 0x56e   :  { %p615_p7 = scmp.ne.s32.totalorder %s746_s5, %s614_s27  ;;  %p618_p8 = scmp.lt.u32.totalorder %s614_s27, %s746_s5 }
 0x570   :  { %p620_p9 = pnand %p618_p8, %p615_p7 }
 0x572   :  { %623 = shalt.err (!%p620_p9)
}
 0x573   :  { %476 = dma.vmem_to_hbm [thread:$0]  %s474_s24, 32, %s746_s5, [#allocation4]  }
 0x574   :  { %628 = dma.done.wait [#allocation4], 32  }
 0x575   :  { %629 = vsyncadd [#allocation4], 4294967264 }
 0x576   :  { %480 = vsyncpa [#allocation3], 1 }
 0x577   :  { %481 = vsyncpa [#allocation6], 1 }
 0x578   :  { %482 = vsyncpa [#allocation4], 1 }

</bundles_post_ra>
